<compile_context>
chip_gen: v5e
topology: v5e:2x2
jax: 0.10.0
libtpu: 0.0.40
codegen_flags: <defaults>
</compile_context>

<pallas_src>
import functools

import jax
import jax.numpy as jnp
from jax.experimental import pallas as pl
from jax.experimental.pallas import tpu as pltpu


def _round_up(x, m):
    return ((x + m - 1) // m) * m


# Conservative double-buffered VMEM footprint for the single-block path.
# Fits comfortably inside the scoped-VMEM defaults on v5e (16 MiB),
# v6e (32 MiB) and v7x (32 MiB) without touching vmem_limit_bytes.
_VMEM_BUDGET_BYTES = 20 * 1024 * 1024


def _linear_bias_kernel(x_ref, w_ref, b_ref, o_ref):
    """Single-K-block tile: o = x @ w + b (bf16 in, f32 accumulate, f32 out)."""
    acc = jnp.dot(x_ref[...], w_ref[...], preferred_element_type=jnp.float32)
    o_ref[...] = (acc + b_ref[...].astype(jnp.float32)).astype(o_ref.dtype)


def _linear_bias_acc_kernel(x_ref, w_ref, b_ref, o_ref, acc_ref):
    """K-streaming tile: partial products accumulated in f32 VMEM scratch."""
    k = pl.program_id(2)

    @pl.when(k == 0)
    def _():
        acc_ref[...] = jnp.zeros_like(acc_ref)

    acc_ref[...] += jnp.dot(
        x_ref[...], w_ref[...], preferred_element_type=jnp.float32
    )

    @pl.when(k == pl.num_programs(2) - 1)
    def _():
        # Bias block index is constant across K, so it is VMEM-resident;
        # added once in the epilogue in f32 before the final cast/store.
        o_ref[...] = (acc_ref[...] + b_ref[...].astype(jnp.float32)).astype(
            o_ref.dtype
        )


def _inner_encoder(x_flat, w, b, *, out_dtype=jnp.float32):
    """Pallas-backed linear encoder: (B, K) @ (K, D) + (1, D) -> (B, D)."""
    B, K = x_flat.shape
    Kw, D = w.shape
    assert K == Kw, (K, Kw)

    # ---- layout / tiling decisions -------------------------------------
    # Lane-dense output: pad output features to a multiple of 128 lanes.
    Dp = _round_up(D, 128)
    tn = Dp if Dp <= 512 else 128

    # Batch (M) tile: align to bf16 sublane packing (16) and cap it.
    tm = min(_round_up(B, 16), 256)
    Bp = _round_up(B, tm)

    # bf16 streaming halves HBM traffic; MXU accumulates in f32.
    xb = x_flat.astype(jnp.bfloat16)
    wb = w.astype(jnp.bfloat16)
    bf = b.astype(jnp.float32)
    if Bp != B:
        xb = jnp.pad(xb, ((0, Bp - B), (0, 0)))
    if Dp != D:
        wb = jnp.pad(wb, ((0, 0), (0, Dp - D)))
        bf = jnp.pad(bf, ((0, 0), (0, Dp - D)))

    grid_m = Bp // tm
    grid_n = Dp // tn

    # Double-buffered VMEM bytes if all of K lives in a single block.
    single_block_bytes = 2 * (tm * K * 2 + K * tn * 2 + tm * tn * 4 + tn * 4)

    if single_block_bytes <= _VMEM_BUDGET_BYTES:
        # ---- single K block: one clean MXU pass, no reduction grid ------
        out = pl.pallas_call(
            _linear_bias_kernel,
            out_shape=jax.ShapeDtypeStruct((Bp, Dp), out_dtype),
            grid_spec=pltpu.PrefetchScalarGridSpec(
                num_scalar_prefetch=0,
                grid=(grid_m, grid_n),
                in_specs=[
                    pl.BlockSpec((tm, K), lambda i, j: (i, 0)),   # x tile
                    pl.BlockSpec((K, tn), lambda i, j: (0, j)),   # W tile
                    pl.BlockSpec((1, tn), lambda i, j: (0, j)),   # bias
                ],
                out_specs=pl.BlockSpec((tm, tn), lambda i, j: (i, j)),
            ),
            compiler_params=pltpu.CompilerParams(
                dimension_semantics=("parallel", "parallel"),
            ),
        )(xb, wb, bf)
    else:
        # ---- weight streaming: big K tiles amortize per-step overhead ---
        tk = max(512, (4 * 1024 * 1024) // (tn * 2))   # ~4 MiB bf16 W tile
        tk = _round_up(tk, 512)
        Kp = _round_up(K, tk)
        if Kp != K:
            xb = jnp.pad(xb, ((0, 0), (0, Kp - K)))
            wb = jnp.pad(wb, ((0, Kp - K), (0, 0)))
        grid_k = Kp // tk

        out = pl.pallas_call(
            _linear_bias_acc_kernel,
            out_shape=jax.ShapeDtypeStruct((Bp, Dp), out_dtype),
            grid_spec=pltpu.PrefetchScalarGridSpec(
                num_scalar_prefetch=0,
                grid=(grid_m, grid_n, grid_k),
                in_specs=[
                    pl.BlockSpec((tm, tk), lambda i, j, k: (i, k)),
                    pl.BlockSpec((tk, tn), lambda i, j, k: (k, j)),
                    pl.BlockSpec((1, tn), lambda i, j, k: (0, j)),  # resident
                ],
                out_specs=pl.BlockSpec((tm, tn), lambda i, j, k: (i, j)),
                scratch_shapes=[pltpu.VMEM((tm, tn), jnp.float32)],
            ),
            compiler_params=pltpu.CompilerParams(
                dimension_semantics=("parallel", "parallel", "arbitrary"),
            ),
        )(xb, wb, bf)

    # Strip batch / output-feature padding.
    return out[:B, :D]


@functools.partial(jax.jit, static_argnames=("vae", "training"))
def image_encoder_forward(x, w, b, *, vae=True, training=False, key=None):
    """JAX/Pallas equivalent of ImageEncoder.forward.

    x: (B, C, H, W) float32 (NCHW, as in PyTorch).
    Returns (enc, mu, log_var) with PyTorch semantics.
    """
    B = x.shape[0]
    x_flat = x.reshape(B, -1)                 # flatten NCHW row-major
    enc = _inner_encoder(x_flat, w, b)        # hot path in Pallas

    if vae:
        D = enc.shape[1]
        mu = enc[:, : D // 2]
        log_var = enc[:, D // 2:]
        if training:
            if key is None:
                raise ValueError(
                    "A PRNG key is required when vae=True and training=True."
                )
            # Reparameterization trick: mu + eps * exp(log_var / 2).
            eps = jax.random.normal(key, mu.shape, dtype=mu.dtype)
            enc = mu + eps * jnp.exp(0.5 * log_var)
        else:
            enc = mu
    else:
        mu, log_var = None, None
    return enc, mu, log_var


if __name__ == "__main__":
    # Small shapes: batch=2, channels=4, spatial=16x16, latent=32 -> enc width 64.
    B, C, H, W = 2, 4, 16, 16
    latent = 32
    K = C * H * W                 # 1024 input features
    D = 2 * latent                # 64 encoder outputs (mu || log_var)

    key = jax.random.PRNGKey(0)
    kx, kw, kb, ksample = jax.random.split(key, 4)

    x = jax.random.normal(kx, (B, C, H, W), dtype=jnp.float32)
    # Deterministic parameter init (synthetic weights, not a checkpoint).
    w = jax.random.normal(kw, (K, D), dtype=jnp.float32) * (1.0 / jnp.sqrt(K))
    b = jax.random.normal(kb, (1, D), dtype=jnp.float32) * 0.01

    enc, mu, log_var = image_encoder_forward(x, w, b, vae=True, training=False)
    jax.block_until_ready(enc)

    # Reference with the same bf16 input cast, f32 accumulation.
    ref = jnp.dot(
        x.reshape(B, -1).astype(jnp.bfloat16),
        w.astype(jnp.bfloat16),
        preferred_element_type=jnp.float32,
    ) + b
    ref_mu = ref[:, : D // 2]
    ref_lv = ref[:, D // 2:]
    assert enc.shape == (B, D // 2)
    assert jnp.allclose(enc, ref_mu, atol=2e-2, rtol=2e-2)
    assert jnp.allclose(mu, ref_mu, atol=2e-2, rtol=2e-2)
    assert jnp.allclose(log_var, ref_lv, atol=2e-2, rtol=2e-2)

    # Ragged shapes (C*H*W not a multiple of 256, e.g. MNIST-like 1x28x28).
    K2 = 1 * 28 * 28
    x2 = jax.random.normal(kx, (B, 1, 28, 28), dtype=jnp.float32)
    w2 = jax.random.normal(kw, (K2, D), dtype=jnp.float32) * (1.0 / jnp.sqrt(K2))
    enc2, mu2, lv2 = image_encoder_forward(x2, w2, b, vae=True, training=False)
    jax.block_until_ready(enc2)
    ref2 = jnp.dot(
        x2.reshape(B, -1).astype(jnp.bfloat16),
        w2.astype(jnp.bfloat16),
        preferred_element_type=jnp.float32,
    ) + b
    assert jnp.allclose(enc2, ref2[:, : D // 2], atol=2e-2, rtol=2e-2)

    # Training path (reparameterization sampling) runs with an explicit key.
    enc_t, mu_t, lv_t = image_encoder_forward(
        x, w, b, vae=True, training=True, key=ksample
    )
    jax.block_until_ready(enc_t)
    assert enc_t.shape == (B, D // 2)

    print("KERNEL_OK")
</pallas_src>

<mosaic_0001>
module attributes {stable_mosaic.version = 11 : i64} {
  func.func @_linear_bias_kernel(%arg0: i32, %arg1: i32, %arg2: memref<16x1024xbf16, #tpu.memory_space<vmem>>, %arg3: memref<1024x128xbf16, #tpu.memory_space<vmem>>, %arg4: memref<1x128xf32, #tpu.memory_space<vmem>>, %arg5: memref<16x128xf32, #tpu.memory_space<vmem>>) attributes {dimension_semantics = [#tpu.dimension_semantics<parallel>, #tpu.dimension_semantics<parallel>], iteration_bounds = array<i64: 1, 1>, scalar_prefetch = 0 : i64, scratch_operands = 0 : i64, tpu.core_type = #tpu.core_type<tc>, window_params = [{transform_indices = @transform_0, window_bounds = array<i64: 16, 1024>}, {transform_indices = @transform_1, window_bounds = array<i64: 1024, 128>}, {transform_indices = @transform_2, window_bounds = array<i64: 1, 128>}, {transform_indices = @transform_3, window_bounds = array<i64: 16, 128>}]} {
    %c0 = arith.constant 0 : index
    %c0_0 = arith.constant 0 : index
    %0 = vector.load %arg2[%c0, %c0_0] : memref<16x1024xbf16, #tpu.memory_space<vmem>>, vector<16x1024xbf16>
    %c0_1 = arith.constant 0 : index
    %c0_2 = arith.constant 0 : index
    %1 = vector.load %arg3[%c0_1, %c0_2] : memref<1024x128xbf16, #tpu.memory_space<vmem>>, vector<1024x128xbf16>
    %cst = arith.constant dense<0.000000e+00> : vector<16x128xf32>
    %2 = tpu.matmul %0, %1, %cst {dimension_numbers = #tpu.dot_dimension_numbers<[1], [0], [0], [1], [0, 0, 1, 1], [], []>} : vector<16x1024xbf16>, vector<1024x128xbf16>, vector<16x128xf32> -> vector<16x128xf32>
    %c0_3 = arith.constant 0 : index
    %c0_4 = arith.constant 0 : index
    %3 = vector.load %arg4[%c0_3, %c0_4] : memref<1x128xf32, #tpu.memory_space<vmem>>, vector<1x128xf32>
    %4 = vector.broadcast %3 : vector<1x128xf32> to vector<16x128xf32>
    %5 = arith.addf %2, %4 : vector<16x128xf32>
    %c0_5 = arith.constant 0 : index
    %c0_6 = arith.constant 0 : index
    %6 = vector.load %arg5[%c0_5, %c0_6] : memref<16x128xf32, #tpu.memory_space<vmem>>, vector<16x128xf32>
    tpu.vector_store %arg5[%c0_5, %c0_6], %5 {strides = array<i32>} : memref<16x128xf32, #tpu.memory_space<vmem>>, vector<16x128xf32>,
    return
  }
  func.func @transform_0(%arg0: i32, %arg1: i32) -> (i32, i32) {
    %c0_i32 = arith.constant 0 : i32
    %c0_i32_0 = arith.constant 0 : i32
    return %arg0, %c0_i32 : i32, i32
  }
  func.func @transform_1(%arg0: i32, %arg1: i32) -> (i32, i32) {
    %c0_i32 = arith.constant 0 : i32
    %c0_i32_0 = arith.constant 0 : i32
    return %c0_i32, %arg1 : i32, i32
  }
  func.func @transform_2(%arg0: i32, %arg1: i32) -> (i32, i32) {
    %c0_i32 = arith.constant 0 : i32
    %c0_i32_0 = arith.constant 0 : i32
    return %c0_i32, %arg1 : i32, i32
  }
  func.func @transform_3(%arg0: i32, %arg1: i32) -> (i32, i32) {
    %c0_i32 = arith.constant 0 : i32
    return %arg0, %arg1 : i32, i32
  }
}

</mosaic_0001>

<bundles_post_ra>
// kernel: image_encoder_forward.1
= control target key start
LH: loop header
LB: loop body
LE: loop exit
PB: predicated region body
PF: predicated region fallthrough
CT: control target
= control target key end

     0   :  { %s1326_s1 = inlined_call_operand.vmem [shape: bf16[1024,128], index: 1, kind: input, shape index: {}]   ;;  %s1327_s2 = inlined_call_operand.vmem [shape: f32[1,128], index: 2, kind: input, shape index: {}]   ;;  %s1328_s0 = inlined_call_operand.vmem [shape: bf16[16,1024], index: 0, kind: input, shape index: {}]   ;;  %s1329_s3 = inlined_call_operand.vmem [shape: f32[16,128], index: 3, kind: output, shape index: {}]  }
   0x1   :  { %v999_v0 = vld [vmem:[%s1326_s1 + $0x38] sm:$0xff]  ;;  %v998_v4 = vld [vmem:[%s1326_s1 + $0x30] sm:$0xff]  ;;  %v997_v8 = vld [vmem:[%s1326_s1 + $0x28] sm:$0xff] }
   0x2   :  { %v1007_v1 = vld [vmem:[%s1326_s1 + $0x78] sm:$0xff]  ;;  %578 = vmatpush.bf16.msra.mxu0 %v999_v0  ;;  %v1006_v5 = vld [vmem:[%s1326_s1 + $0x70] sm:$0xff]  ;;  %v1005_v9 = vld [vmem:[%s1326_s1 + $0x68] sm:$0xff] }
   0x3   :  { %v1015_v2 = vld [vmem:[%s1326_s1 + $0xb8] sm:$0xff]  ;;  %592 = vmatpush.bf16.msra.mxu1 %v1007_v1  ;;  %v1014_v6 = vld [vmem:[%s1326_s1 + $0xb0] sm:$0xff]  ;;  %v1013_v10 = vld [vmem:[%s1326_s1 + $0xa8] sm:$0xff] }
   0x4   :  { %v1023_v3 = vld [vmem:[%s1326_s1 + $0xf8] sm:$0xff]  ;;  %606 = vmatpush.bf16.msra.mxu2 %v1015_v2  ;;  %v1022_v7 = vld [vmem:[%s1326_s1 + $0xf0] sm:$0xff]  ;;  %v1021_v11 = vld [vmem:[%s1326_s1 + $0xe8] sm:$0xff] }
   0x5   :  { %620 = vmatpush.bf16.msra.mxu3 %v1023_v3  ;;  %v996_v12 = vld [vmem:[%s1326_s1 + $0x20] sm:$0xff]  ;;  %v995_v16 = vld [vmem:[%s1326_s1 + $0x18] sm:$0xff]  ;;  %v994_v20 = vld [vmem:[%s1326_s1 + $0x10] sm:$0xff] }
   0x6   :  { %579 = vmatpush.bf16.msra.mxu0 %v998_v4  ;;  %v1004_v13 = vld [vmem:[%s1326_s1 + $0x60] sm:$0xff]  ;;  %v1003_v17 = vld [vmem:[%s1326_s1 + $0x58] sm:$0xff]  ;;  %v1002_v21 = vld [vmem:[%s1326_s1 + $0x50] sm:$0xff] }
   0x7   :  { %593 = vmatpush.bf16.msra.mxu1 %v1006_v5  ;;  %v1012_v14 = vld [vmem:[%s1326_s1 + $0xa0] sm:$0xff]  ;;  %v1011_v18 = vld [vmem:[%s1326_s1 + $0x98] sm:$0xff]  ;;  %v1010_v22 = vld [vmem:[%s1326_s1 + $0x90] sm:$0xff] }
   0x8   :  { %607 = vmatpush.bf16.msra.mxu2 %v1014_v6  ;;  %v1020_v15 = vld [vmem:[%s1326_s1 + $0xe0] sm:$0xff]  ;;  %v1019_v19 = vld [vmem:[%s1326_s1 + $0xd8] sm:$0xff]  ;;  %v1018_v23 = vld [vmem:[%s1326_s1 + $0xd0] sm:$0xff] }
   0x9   :  { %621 = vmatpush.bf16.msra.mxu3 %v1022_v7  ;;  %v993_v24 = vld [vmem:[%s1326_s1 + $0x8] sm:$0xff]  ;;  %v992_v28 = vld [vmem:[%s1326_s1] sm:$0xff]  ;;  %v1031_v32 = vld [vmem:[%s1326_s1 + $0x138] sm:$0xff] }
   0xa   :  { %580 = vmatpush.bf16.msra.mxu0 %v997_v8  ;;  %v1001_v25 = vld [vmem:[%s1326_s1 + $0x48] sm:$0xff]  ;;  %v1000_v29 = vld [vmem:[%s1326_s1 + $0x40] sm:$0xff]  ;;  %v1039_v33 = vld [vmem:[%s1326_s1 + $0x178] sm:$0xff] }
   0xb   :  { %594 = vmatpush.bf16.msra.mxu1 %v1005_v9  ;;  %v1009_v26 = vld [vmem:[%s1326_s1 + $0x88] sm:$0xff]  ;;  %v1008_v30 = vld [vmem:[%s1326_s1 + $0x80] sm:$0xff]  ;;  %v1047_v42 = vld [vmem:[%s1326_s1 + $0x1b8] sm:$0xff] }
   0xc   :  { %608 = vmatpush.bf16.msra.mxu2 %v1013_v10  ;;  %v1017_v27 = vld [vmem:[%s1326_s1 + $0xc8] sm:$0xff]  ;;  %v1016_v31 = vld [vmem:[%s1326_s1 + $0xc0] sm:$0xff]  ;;  %v1055_v43 = vld [vmem:[%s1326_s1 + $0x1f8] sm:$0xff] }
   0xd   :  { %622 = vmatpush.bf16.msra.mxu3 %v1021_v11  ;;  %v706_v34 = vld [vmem:[%s1328_s0 + $0x8] sm:$0xf]  ;;  %v698_v36 = vld [vmem:[%s1328_s0] sm:$0xf]  ;;  %v985_v38 = vld [vmem:[%s1328_s0 + $0xc] sm:$0xf] }
   0xe   :  { %581 = vmatpush.bf16.msra.mxu0 %v996_v12  ;;  %v989_v35 = vld [vmem:[%s1328_s0 + $0x24] sm:$0xf0]  ;;  %v988_v37 = vld [vmem:[%s1328_s0 + $0x1c] sm:$0xf0]  ;;  %v708_v39 = vld [vmem:[%s1328_s0 + $0x28] sm:$0xf0] }
   0xf   :  { %595 = vmatpush.bf16.msra.mxu1 %v1004_v13  ;;  %v984_v40 = vld [vmem:[%s1328_s0 + $0x4] sm:$0xf]  ;;  %v707_v44 = vor.u32 %v989_v35, %v706_v34  ;;  %v699_v45 = vor.u32 %v988_v37, %v698_v36  ;;  %v711_v46 = vor.u32 %v985_v38, %v708_v39  ;;  %v1030_v48 = vld [vmem:[%s1326_s1 + $0x130] sm:$0xff]  ;;  %v1029_v52 = vld [vmem:[%s1326_s1 + $0x128] sm:$0xff] }
  0x10   :  { %609 = vmatpush.bf16.msra.mxu2 %v1012_v14  ;;  %v700_v41 = vld [vmem:[%s1328_s0 + $0x20] sm:$0xf0]  ;;  %v1038_v49 = vld [vmem:[%s1326_s1 + $0x170] sm:$0xff]  ;;  %v1037_v53 = vld [vmem:[%s1326_s1 + $0x168] sm:$0xff] }
  0x11   :  { %623 = vmatpush.bf16.msra.mxu3 %v1020_v15  ;;  %v703_v47 = vor.u32 %v984_v40, %v700_v41  ;;  %v1046_v50 = vld [vmem:[%s1326_s1 + $0x1b0] sm:$0xff]  ;;  %v1045_v54 = vld [vmem:[%s1326_s1 + $0x1a8] sm:$0xff]  ;;  %v1028_v56 = vld [vmem:[%s1326_s1 + $0x120] sm:$0xff] }
  0x12   :  { %582 = vmatpush.bf16.msra.mxu0 %v995_v16  ;;  %v1054_v51 = vld [vmem:[%s1326_s1 + $0x1f0] sm:$0xff]  ;;  %v1053_v55 = vld [vmem:[%s1326_s1 + $0x1e8] sm:$0xff]  ;;  %v1036_v57 = vld [vmem:[%s1326_s1 + $0x160] sm:$0xff] }
  0x13   :  { %596 = vmatpush.bf16.msra.mxu1 %v1003_v17  ;;  %v1044_v58 = vld [vmem:[%s1326_s1 + $0x1a0] sm:$0xff]  ;;  %v1027_v60 = vld [vmem:[%s1326_s1 + $0x118] sm:$0xff]  ;;  %v1026_v0 = vld [vmem:[%s1326_s1 + $0x110] sm:$0xff] }
  0x14   :  { %610 = vmatpush.bf16.msra.mxu2 %v1011_v18  ;;  %v1052_v59 = vld [vmem:[%s1326_s1 + $0x1e0] sm:$0xff]  ;;  %v1035_v61 = vld [vmem:[%s1326_s1 + $0x158] sm:$0xff]  ;;  %v1034_v1 = vld [vmem:[%s1326_s1 + $0x150] sm:$0xff] }
  0x15   :  { %624 = vmatpush.bf16.msra.mxu3 %v1019_v19  ;;  %v1043_v62 = vld [vmem:[%s1326_s1 + $0x198] sm:$0xff]  ;;  %v1042_v2 = vld [vmem:[%s1326_s1 + $0x190] sm:$0xff]  ;;  %v1025_v4 = vld [vmem:[%s1326_s1 + $0x108] sm:$0xff] }
  0x16   :  { %583 = vmatpush.bf16.msra.mxu0 %v994_v20  ;;  %v1051_v63 = vld [vmem:[%s1326_s1 + $0x1d8] sm:$0xff]  ;;  %v1050_v3 = vld [vmem:[%s1326_s1 + $0x1d0] sm:$0xff]  ;;  %v1033_v5 = vld [vmem:[%s1326_s1 + $0x148] sm:$0xff] }
  0x17   :  { %597 = vmatpush.bf16.msra.mxu1 %v1002_v21  ;;  %v1041_v6 = vld [vmem:[%s1326_s1 + $0x188] sm:$0xff]  ;;  %v1024_v8 = vld [vmem:[%s1326_s1 + $0x100] sm:$0xff]  ;;  %v714_v12 = vld [vmem:[%s1328_s0 + $0x10] sm:$0xf] }
  0x18   :  { %611 = vmatpush.bf16.msra.mxu2 %v1010_v22  ;;  %v1049_v7 = vld [vmem:[%s1326_s1 + $0x1c8] sm:$0xff]  ;;  %v1032_v9 = vld [vmem:[%s1326_s1 + $0x140] sm:$0xff]  ;;  %v990_v13 = vld [vmem:[%s1328_s0 + $0x2c] sm:$0xf0] }
  0x19   :  { %625 = vmatpush.bf16.msra.mxu3 %v1018_v23  ;;  %v1040_v10 = vld [vmem:[%s1326_s1 + $0x180] sm:$0xff]  ;;  %v986_v14 = vld [vmem:[%s1328_s0 + $0x14] sm:$0xf]  ;;  %v722_v16 = vld [vmem:[%s1328_s0 + $0x18] sm:$0xf]  ;;  %v715_v20 = vor.u32 %v990_v13, %v714_v12 }
  0x1a   :  { %584 = vmatpush.bf16.msra.mxu0 %v993_v24  ;;  %v1048_v11 = vld [vmem:[%s1326_s1 + $0x1c0] sm:$0xff]  ;;  %v716_v15 = vld [vmem:[%s1328_s0 + $0x30] sm:$0xf0]  ;;  %v991_v17 = vld [vmem:[%s1328_s0 + $0x34] sm:$0xf0] }
  0x1b   :  { %598 = vmatpush.bf16.msra.mxu1 %v1001_v25  ;;  %v987_v18 = vld [vmem:[%s1328_s0 + $0x1c] sm:$0xf]  ;;  %v719_v21 = vor.u32 %v986_v14, %v716_v15  ;;  %v723_v22 = vor.u32 %v991_v17, %v722_v16  ;;  %v1056_v25 = vld [vmem:[%s1327_s2] ss:$0 sm:$0xff] }
  0x1c   :  { %612 = vmatpush.bf16.msra.mxu2 %v1009_v26  ;;  %v724_v19 = vld [vmem:[%s1328_s0 + $0x38] sm:$0xf0] }
  0x1d   :  { %626 = vmatpush.bf16.msra.mxu3 %v1017_v27  ;;  %v727_v23 = vor.u32 %v987_v18, %v724_v19 }
  0x1e   :  { %585 = vmatpush.bf16.msra.mxu0 %v992_v28 }
  0x1f   :  { %599 = vmatpush.bf16.msra.mxu1 %v1000_v29 }
  0x20   :  { %613 = vmatpush.bf16.msra.mxu2 %v1008_v30 }
  0x21   :  { %627 = vmatpush.bf16.msra.mxu3 %v1016_v31  ;;  %586 = vmatmul.bf16.vlgmr.msra.gmra.mxu0 %v699_v45 }
  0x22   :  { %634 = vmatpush.bf16.msrb.mxu0 %v1031_v32  ;;  %600 = vmatmul.bf16.vlgmr.msra.gmra.mxu1 %v703_v47 }
  0x23   :  { %648 = vmatpush.bf16.msrb.mxu1 %v1039_v33  ;;  %614 = vmatmul.bf16.vlgmr.msra.gmra.mxu2 %v707_v44 }
  0x24   :  { %662 = vmatpush.bf16.msrb.mxu2 %v1047_v42  ;;  %628 = vmatmul.bf16.vlgmr.msra.gmra.mxu3 %v711_v46 }
  0x25   :  { %676 = vmatpush.bf16.msrb.mxu3 %v1055_v43 }
  0x26   :  { %635 = vmatpush.bf16.msrb.mxu0 %v1030_v48 }
  0x27   :  { %649 = vmatpush.bf16.msrb.mxu1 %v1038_v49 }
  0x28   :  { %663 = vmatpush.bf16.msrb.mxu2 %v1046_v50 }
  0x29   :  { %677 = vmatpush.bf16.msrb.mxu3 %v1054_v51 }
  0x2a   :  { %636 = vmatpush.bf16.msrb.mxu0 %v1029_v52 }
  0x2b   :  { %650 = vmatpush.bf16.msrb.mxu1 %v1037_v53 }
  0x2c   :  { %664 = vmatpush.bf16.msrb.mxu2 %v1045_v54 }
  0x2d   :  { %678 = vmatpush.bf16.msrb.mxu3 %v1053_v55 }
  0x2e   :  { %637 = vmatpush.bf16.msrb.mxu0 %v1028_v56 }
  0x2f   :  { %651 = vmatpush.bf16.msrb.mxu1 %v1036_v57 }
  0x30   :  { %665 = vmatpush.bf16.msrb.mxu2 %v1044_v58 }
  0x31   :  { %679 = vmatpush.bf16.msrb.mxu3 %v1052_v59 }
  0x32   :  { %638 = vmatpush.bf16.msrb.mxu0 %v1027_v60 }
  0x33   :  { %652 = vmatpush.bf16.msrb.mxu1 %v1035_v61 }
  0x34   :  { %666 = vmatpush.bf16.msrb.mxu2 %v1043_v62 }
  0x35   :  { %680 = vmatpush.bf16.msrb.mxu3 %v1051_v63 }
  0x36   :  { %639 = vmatpush.bf16.msrb.mxu0 %v1026_v0 }
  0x37   :  { %653 = vmatpush.bf16.msrb.mxu1 %v1034_v1 }
  0x38   :  { %667 = vmatpush.bf16.msrb.mxu2 %v1042_v2 }
  0x39   :  { %681 = vmatpush.bf16.msrb.mxu3 %v1050_v3 }
  0x3a   :  { %640 = vmatpush.bf16.msrb.mxu0 %v1025_v4 }
  0x3b   :  { %654 = vmatpush.bf16.msrb.mxu1 %v1033_v5 }
  0x3c   :  { %668 = vmatpush.bf16.msrb.mxu2 %v1041_v6 }
  0x3d   :  { %682 = vmatpush.bf16.msrb.mxu3 %v1049_v7 }
  0x3e   :  { %641 = vmatpush.bf16.msrb.mxu0 %v1024_v8 }
  0x3f   :  { %655 = vmatpush.bf16.msrb.mxu1 %v1032_v9 }
  0x40   :  { %669 = vmatpush.bf16.msrb.mxu2 %v1040_v10 }
  0x41   :  { %683 = vmatpush.bf16.msrb.mxu3 %v1048_v11  ;;  %642 = vmatmul.bf16.vlgmr.msrb.gmra.mxu0 %v715_v20 }
  0x42   :  { %656 = vmatmul.bf16.vlgmr.msrb.gmra.mxu1 %v719_v21 }
  0x43   :  { %670 = vmatmul.bf16.vlgmr.msrb.gmra.mxu2 %v723_v22 }
  0x44   :  { %684 = vmatmul.bf16.vlgmr.msrb.gmra.mxu3 %v727_v23 }
  0x9e   :  { %v587_v24 = vpop.f32.mrf.mxu0 }
  0x9f   :  { %v601_v26 = vpop.f32.mrf.mxu1  ;;  %v588_v27 = vadd.f32 %v1056_v25, %v587_v24 }
  0xa1   :  { %v602_v30 = vadd.f32 %v601_v26, %v588_v27 }
  0xa6   :  { %v615_v28 = vpop.f32.mrf.mxu2  ;;  %v589_v31 = vpop.f32.mrf.mxu0 }
  0xa7   :  { %v629_v29 = vpop.f32.mrf.mxu3  ;;  %v603_v32 = vpop.f32.mrf.mxu1  ;;  %v616_v33 = vadd.f32 %v615_v28, %v602_v30  ;;  %v590_v34 = vadd.f32 %v1056_v25, %v589_v31 }
  0xa9   :  { %v630_v37 = vadd.f32 %v629_v29, %v616_v33  ;;  %v604_v38 = vadd.f32 %v603_v32, %v590_v34 }
  0xae   :  { %v617_v35 = vpop.f32.mrf.mxu2 }
  0xaf   :  { %v631_v36 = vpop.f32.mrf.mxu3  ;;  %v618_v42 = vadd.f32 %v617_v35, %v604_v38 }
  0xb1   :  { %v632_v46 = vadd.f32 %v631_v36, %v618_v42 }
  0xbe   :  { %v643_v39 = vpop.f32.mrf.mxu0 }
  0xbf   :  { %v644_v40 = vadd.f32 %v643_v39, %v630_v37  ;;  %v657_v41 = vpop.f32.mrf.mxu1 }
  0xc1   :  { %v658_v43 = vadd.f32 %v657_v41, %v644_v40 }
  0xc6   :  { %v671_v44 = vpop.f32.mrf.mxu2  ;;  %v645_v48 = vpop.f32.mrf.mxu0 }
  0xc7   :  { %v685_v45 = vpop.f32.mrf.mxu3  ;;  %v672_v47 = vadd.f32 %v671_v44, %v658_v43  ;;  %v646_v50 = vadd.f32 %v645_v48, %v632_v46  ;;  %v659_v51 = vpop.f32.mrf.mxu1 }
  0xc9   :  { %v686_v49 = vadd.f32 %v685_v45, %v672_v47  ;;  %v660_v52 = vadd.f32 %v659_v51, %v646_v50 }
  0xcb   :  { %690 = vst [vmem:[%s1329_s3] sm:$0xff] %v686_v49 }
  0xce   :  { %v673_v53 = vpop.f32.mrf.mxu2 }
  0xcf   :  { %v674_v54 = vadd.f32 %v673_v53, %v660_v52  ;;  %v687_v55 = vpop.f32.mrf.mxu3 }
  0xd1   :  { %v688_v56 = vadd.f32 %v687_v55, %v674_v54 }
  0xd3   :  { %691 = vst [vmem:[%s1329_s3 + $0x8] sm:$0xff] %v688_v56 }

</bundles_post_ra>
